<compile_context>
chip_gen: v6e
topology: v6e:2x2x1
jax: 0.10.0
libtpu: 0.0.40
codegen_flags: <defaults>
</compile_context>

<pallas_src>
import functools

import jax
import jax.numpy as jnp
from jax.experimental import pallas as pl
from jax.experimental.pallas import tpu as pltpu


def _round_up(n, m):
    return ((n + m - 1) // m) * m


def _ae_kernel(x_ref,
               w1_ref, b1_ref,
               w2_ref, b2_ref,
               w3_ref, b3_ref,
               w4_ref, b4_ref,
               w5_ref, b5_ref,
               enc_ref, dec_ref):
    """Fused autoencoder on one batch tile. f32 MXU accumulation throughout."""
    cdt = w1_ref.dtype                      # compute dtype of the weights
    x = x_ref[...].astype(cdt)              # VMEM-local cast; no extra HBM traffic

    # ----- Encoder -----
    h = jnp.dot(x, w1_ref[...], preferred_element_type=jnp.float32) + b1_ref[...]
    h = jnp.maximum(h, 0.0).astype(cdt)
    h = jnp.dot(h, w2_ref[...], preferred_element_type=jnp.float32) + b2_ref[...]
    h = jnp.maximum(h, 0.0).astype(cdt)
    enc = jnp.dot(h, w3_ref[...], preferred_element_type=jnp.float32) + b3_ref[...]
    enc_ref[...] = enc.astype(enc_ref.dtype)

    # ----- Decoder -----
    # TODO(synk): nn.Dropout(p=0.2) is identity in eval mode; training-mode
    # random masking is not modeled here.
    d = jnp.dot(enc.astype(cdt), w4_ref[...],
                preferred_element_type=jnp.float32) + b4_ref[...]
    d = jnp.maximum(d, 0.0).astype(cdt)
    dec = jnp.dot(d, w5_ref[...], preferred_element_type=jnp.float32) + b5_ref[...]
    dec_ref[...] = dec.astype(dec_ref.dtype)


def prepare_params(params, compute_dtype=jnp.bfloat16):
    """One-time conversion to kernel layout.

    Weights stay (in, out) == PyTorch W.T, cast to `compute_dtype` (bf16 default
    halves the one-time weight DMA).  Biases become (1, out) float32 — they are
    added to the f32 MXU accumulator.  Do this once at init/load time so the
    per-call forward only launches the pallas_call (no per-call pad/cast ops).
    """
    cdt = jnp.dtype(compute_dtype)
    out = {}
    for k, v in params.items():
        if k.endswith("_w"):
            out[k] = v.astype(cdt)
        else:
            out[k] = v.reshape(1, -1).astype(jnp.float32)
    return out


@functools.partial(jax.jit, static_argnames=("tile_b",))
def model_autoencoder_forward(x, kparams, tile_b=None):
    """x: (B, input_size).  kparams: output of prepare_params().

    Any B is supported: the batch grid uses cdiv and Pallas clips the trailing
    partial block, so there are no pad/slice copies around the kernel.
    """
    B, n_input = x.shape
    out_dtype = x.dtype

    w1, b1 = kparams["enc_fc1_w"], kparams["enc_fc1_b"]
    w2, b2 = kparams["enc_fc2_w"], kparams["enc_fc2_b"]
    w3, b3 = kparams["enc_fcb_w"], kparams["enc_fcb_b"]
    w4, b4 = kparams["dec_fc1_w"], kparams["dec_fc1_b"]
    w5, b5 = kparams["dec_fc2_w"], kparams["dec_fc2_b"]

    n_hidden = w1.shape[1]
    n_bottleneck = w3.shape[1]

    # Sublane packing: 8 rows/vreg tile for 32-bit, 16 for 16-bit compute.
    x_itemsize = jnp.dtype(x.dtype).itemsize
    w_itemsize = jnp.dtype(w1.dtype).itemsize
    align = max(8, 32 // min(x_itemsize, w_itemsize))

    # --- Batch tile selection -------------------------------------------------
    if tile_b is None:
        # Keep >=2 grid steps when B allows it so dimension_semantics=("parallel",)
        # can use both TensorCores on v7x; cap at 2048 rows to amortize the
        # ~0.35us per-step pipeline overhead with a comfortably large DMA.
        tile_b = min(2048, _round_up(max(pl.cdiv(B, 2), align), align))
    tile_b = max(align, _round_up(int(tile_b), align))

    # VMEM-aware cap: double-buffered x/enc/dec tiles + resident (double-buffered)
    # weights + f32 temporaries must fit well under the scoped VMEM limit.
    w_bytes = sum(int(a.size) * jnp.dtype(a.dtype).itemsize
                  for a in (w1, b1, w2, b2, w3, b3, w4, b4, w5, b5))
    out_itemsize = jnp.dtype(out_dtype).itemsize
    per_row = (2 * (n_input * x_itemsize
                    + (n_bottleneck + n_input) * out_itemsize)
               + 4 * (n_input + 2 * n_hidden + n_bottleneck))
    budget = 16 * 1024 * 1024 - 2 * w_bytes
    cap = max(align, (budget // max(per_row, 1)) // align * align)
    tile_b = min(tile_b, cap)
    tile_b = min(tile_b, _round_up(B, align))   # no point tiling past B

    grid = (pl.cdiv(B, tile_b),)   # ragged B: trailing partial block is clipped

    full = lambda a: pl.BlockSpec(a.shape, lambda i: (0, 0))  # resident weights

    grid_spec = pltpu.PrefetchScalarGridSpec(
        num_scalar_prefetch=0,
        grid=grid,
        in_specs=[
            pl.BlockSpec((tile_b, n_input), lambda i: (i, 0)),   # x tile
            full(w1), full(b1),
            full(w2), full(b2),
            full(w3), full(b3),
            full(w4), full(b4),
            full(w5), full(b5),
        ],
        out_specs=[
            pl.BlockSpec((tile_b, n_bottleneck), lambda i: (i, 0)),  # encoded
            pl.BlockSpec((tile_b, n_input), lambda i: (i, 0)),       # decoded
        ],
    )

    encoded, decoded = pl.pallas_call(
        _ae_kernel,
        out_shape=(
            jax.ShapeDtypeStruct((B, n_bottleneck), out_dtype),
            jax.ShapeDtypeStruct((B, n_input), out_dtype),
        ),
        grid_spec=grid_spec,
        compiler_params=pltpu.CompilerParams(
            dimension_semantics=("parallel",),      # megacore-shardable on v7x
            vmem_limit_bytes=32 * 1024 * 1024,       # > v5e's 16 MiB default,
                                                     # <= every chip's physical VMEM
        ),
    )(x, w1, b1, w2, b2, w3, b3, w4, b4, w5, b5)
    return encoded, decoded


def init_params(key, input_size, n_hidden, bottleneck_size, dtype=jnp.float32):
    """Deterministic init; weights (in, out) == PyTorch W.T, biases (1, out)."""
    def linear(k, fan_in, fan_out):
        kw, kb = jax.random.split(k)
        bound = 1.0 / jnp.sqrt(fan_in)
        w = jax.random.uniform(kw, (fan_in, fan_out), dtype, -bound, bound)
        b = jax.random.uniform(kb, (1, fan_out), dtype, -bound, bound)
        return w, b

    keys = jax.random.split(key, 5)
    p = {}
    p["enc_fc1_w"], p["enc_fc1_b"] = linear(keys[0], input_size, n_hidden)
    p["enc_fc2_w"], p["enc_fc2_b"] = linear(keys[1], n_hidden, n_hidden)
    p["enc_fcb_w"], p["enc_fcb_b"] = linear(keys[2], n_hidden, bottleneck_size)
    p["dec_fc1_w"], p["dec_fc1_b"] = linear(keys[3], bottleneck_size, n_hidden)
    p["dec_fc2_w"], p["dec_fc2_b"] = linear(keys[4], n_hidden, input_size)
    return p


def _reference_forward(x, p):
    relu = lambda v: jnp.maximum(v, 0.0)
    h = relu(x @ p["enc_fc1_w"] + p["enc_fc1_b"])
    h = relu(h @ p["enc_fc2_w"] + p["enc_fc2_b"])
    enc = h @ p["enc_fcb_w"] + p["enc_fcb_b"]
    d = relu(enc @ p["dec_fc1_w"] + p["dec_fc1_b"])
    dec = d @ p["dec_fc2_w"] + p["dec_fc2_b"]
    return enc, dec


if __name__ == "__main__":
    key = jax.random.PRNGKey(0)
    k_x, k_x2, k_x3, k_p = jax.random.split(key, 4)

    input_size, n_hidden, bottleneck_size = 64, 32, 16
    params = init_params(k_p, input_size, n_hidden, bottleneck_size)

    kparams_f32 = prepare_params(params, jnp.float32)    # exact path
    kparams_bf16 = prepare_params(params, jnp.bfloat16)  # default fast path

    # --- Test 1: small batch, f32 compute, strict check vs reference ---
    batch = 8
    x = jax.random.normal(k_x, (batch, input_size), jnp.float32)
    enc, dec = model_autoencoder_forward(x, kparams_f32)
    jax.block_until_ready((enc, dec))
    enc_r, dec_r = _reference_forward(x, params)
    assert enc.shape == (batch, bottleneck_size)
    assert dec.shape == (batch, input_size)
    assert jnp.allclose(enc, enc_r, atol=1e-5, rtol=1e-5)
    assert jnp.allclose(dec, dec_r, atol=1e-5, rtol=1e-5)

    # --- Test 2: ragged batch (not a multiple of the tile), f32 compute ---
    batch2 = 300
    x2 = jax.random.normal(k_x2, (batch2, input_size), jnp.float32)
    enc2, dec2 = model_autoencoder_forward(x2, kparams_f32)
    jax.block_until_ready((enc2, dec2))
    enc2_r, dec2_r = _reference_forward(x2, params)
    assert enc2.shape == (batch2, bottleneck_size)
    assert dec2.shape == (batch2, input_size)
    assert jnp.allclose(enc2, enc2_r, atol=1e-5, rtol=1e-5)
    assert jnp.allclose(dec2, dec2_r, atol=1e-5, rtol=1e-5)

    # --- Test 3: bf16 weights (f32 accumulation), loose tolerance ---
    batch3 = 256
    x3 = jax.random.normal(k_x3, (batch3, input_size), jnp.float32)
    enc3, dec3 = model_autoencoder_forward(x3, kparams_bf16)
    jax.block_until_ready((enc3, dec3))
    enc3_r, dec3_r = _reference_forward(x3, params)
    assert enc3.shape == (batch3, bottleneck_size)
    assert dec3.shape == (batch3, input_size)
    assert jnp.allclose(enc3, enc3_r, atol=5e-2, rtol=5e-2)
    assert jnp.allclose(dec3, dec3_r, atol=5e-2, rtol=5e-2)

    print("KERNEL_OK")
</pallas_src>

<mosaic_0001>
module attributes {stable_mosaic.version = 11 : i64} {
  func.func @_ae_kernel(%arg0: i32, %arg1: memref<8x64xf32, #tpu.memory_space<vmem>>, %arg2: memref<64x32xf32, #tpu.memory_space<vmem>>, %arg3: memref<1x32xf32, #tpu.memory_space<vmem>>, %arg4: memref<32x32xf32, #tpu.memory_space<vmem>>, %arg5: memref<1x32xf32, #tpu.memory_space<vmem>>, %arg6: memref<32x16xf32, #tpu.memory_space<vmem>>, %arg7: memref<1x16xf32, #tpu.memory_space<vmem>>, %arg8: memref<16x32xf32, #tpu.memory_space<vmem>>, %arg9: memref<1x32xf32, #tpu.memory_space<vmem>>, %arg10: memref<32x64xf32, #tpu.memory_space<vmem>>, %arg11: memref<1x64xf32, #tpu.memory_space<vmem>>, %arg12: memref<8x16xf32, #tpu.memory_space<vmem>>, %arg13: memref<8x64xf32, #tpu.memory_space<vmem>>) attributes {dimension_semantics = [#tpu.dimension_semantics<parallel>], iteration_bounds = array<i64: 1>, scalar_prefetch = 0 : i64, scratch_operands = 0 : i64, tpu.core_type = #tpu.core_type<tc>, window_params = [{transform_indices = @transform_0, window_bounds = array<i64: 8, 64>}, {pipeline_mode = #tpu.pipeline_mode<synchronous>, transform_indices = @transform_1, window_bounds = array<i64: 64, 32>}, {pipeline_mode = #tpu.pipeline_mode<synchronous>, transform_indices = @transform_2, window_bounds = array<i64: 1, 32>}, {pipeline_mode = #tpu.pipeline_mode<synchronous>, transform_indices = @transform_3, window_bounds = array<i64: 32, 32>}, {pipeline_mode = #tpu.pipeline_mode<synchronous>, transform_indices = @transform_4, window_bounds = array<i64: 1, 32>}, {pipeline_mode = #tpu.pipeline_mode<synchronous>, transform_indices = @transform_5, window_bounds = array<i64: 32, 16>}, {pipeline_mode = #tpu.pipeline_mode<synchronous>, transform_indices = @transform_6, window_bounds = array<i64: 1, 16>}, {pipeline_mode = #tpu.pipeline_mode<synchronous>, transform_indices = @transform_7, window_bounds = array<i64: 16, 32>}, {pipeline_mode = #tpu.pipeline_mode<synchronous>, transform_indices = @transform_8, window_bounds = array<i64: 1, 32>}, {pipeline_mode = #tpu.pipeline_mode<synchronous>, transform_indices = @transform_9, window_bounds = array<i64: 32, 64>}, {pipeline_mode = #tpu.pipeline_mode<synchronous>, transform_indices = @transform_10, window_bounds = array<i64: 1, 64>}, {transform_indices = @transform_11, window_bounds = array<i64: 8, 16>}, {transform_indices = @transform_12, window_bounds = array<i64: 8, 64>}]} {
    %c0 = arith.constant 0 : index
    %c0_0 = arith.constant 0 : index
    %0 = vector.load %arg1[%c0, %c0_0] : memref<8x64xf32, #tpu.memory_space<vmem>>, vector<8x64xf32>
    %c0_1 = arith.constant 0 : index
    %c0_2 = arith.constant 0 : index
    %1 = vector.load %arg2[%c0_1, %c0_2] : memref<64x32xf32, #tpu.memory_space<vmem>>, vector<64x32xf32>
    %cst = arith.constant dense<0.000000e+00> : vector<8x32xf32>
    %2 = tpu.matmul %0, %1, %cst {dimension_numbers = #tpu.dot_dimension_numbers<[1], [0], [0], [1], [0, 0, 1, 1], [], []>} : vector<8x64xf32>, vector<64x32xf32>, vector<8x32xf32> -> vector<8x32xf32>
    %c0_3 = arith.constant 0 : index
    %c0_4 = arith.constant 0 : index
    %3 = vector.load %arg3[%c0_3, %c0_4] : memref<1x32xf32, #tpu.memory_space<vmem>>, vector<1x32xf32>
    %4 = vector.broadcast %3 : vector<1x32xf32> to vector<8x32xf32>
    %5 = arith.addf %2, %4 : vector<8x32xf32>
    %cst_5 = arith.constant 0.000000e+00 : f32
    %6 = vector.broadcast %cst_5 : f32 to vector<8x32xf32>
    %7 = arith.maximumf %5, %6 : vector<8x32xf32>
    %c0_6 = arith.constant 0 : index
    %c0_7 = arith.constant 0 : index
    %8 = vector.load %arg4[%c0_6, %c0_7] : memref<32x32xf32, #tpu.memory_space<vmem>>, vector<32x32xf32>
    %cst_8 = arith.constant dense<0.000000e+00> : vector<8x32xf32>
    %9 = tpu.matmul %7, %8, %cst_8 {dimension_numbers = #tpu.dot_dimension_numbers<[1], [0], [0], [1], [0, 0, 1, 1], [], []>} : vector<8x32xf32>, vector<32x32xf32>, vector<8x32xf32> -> vector<8x32xf32>
    %c0_9 = arith.constant 0 : index
    %c0_10 = arith.constant 0 : index
    %10 = vector.load %arg5[%c0_9, %c0_10] : memref<1x32xf32, #tpu.memory_space<vmem>>, vector<1x32xf32>
    %11 = vector.broadcast %10 : vector<1x32xf32> to vector<8x32xf32>
    %12 = arith.addf %9, %11 : vector<8x32xf32>
    %cst_11 = arith.constant 0.000000e+00 : f32
    %13 = vector.broadcast %cst_11 : f32 to vector<8x32xf32>
    %14 = arith.maximumf %12, %13 : vector<8x32xf32>
    %c0_12 = arith.constant 0 : index
    %c0_13 = arith.constant 0 : index
    %15 = vector.load %arg6[%c0_12, %c0_13] : memref<32x16xf32, #tpu.memory_space<vmem>>, vector<32x16xf32>
    %cst_14 = arith.constant dense<0.000000e+00> : vector<8x16xf32>
    %16 = tpu.matmul %14, %15, %cst_14 {dimension_numbers = #tpu.dot_dimension_numbers<[1], [0], [0], [1], [0, 0, 1, 1], [], []>} : vector<8x32xf32>, vector<32x16xf32>, vector<8x16xf32> -> vector<8x16xf32>
    %c0_15 = arith.constant 0 : index
    %c0_16 = arith.constant 0 : index
    %17 = vector.load %arg7[%c0_15, %c0_16] : memref<1x16xf32, #tpu.memory_space<vmem>>, vector<1x16xf32>
    %18 = vector.broadcast %17 : vector<1x16xf32> to vector<8x16xf32>
    %19 = arith.addf %16, %18 : vector<8x16xf32>
    %c0_17 = arith.constant 0 : index
    %c0_18 = arith.constant 0 : index
    %20 = vector.load %arg12[%c0_17, %c0_18] : memref<8x16xf32, #tpu.memory_space<vmem>>, vector<8x16xf32>
    tpu.vector_store %arg12[%c0_17, %c0_18], %19 {strides = array<i32>} : memref<8x16xf32, #tpu.memory_space<vmem>>, vector<8x16xf32>,
    %c0_19 = arith.constant 0 : index
    %c0_20 = arith.constant 0 : index
    %21 = vector.load %arg8[%c0_19, %c0_20] : memref<16x32xf32, #tpu.memory_space<vmem>>, vector<16x32xf32>
    %cst_21 = arith.constant dense<0.000000e+00> : vector<8x32xf32>
    %22 = tpu.matmul %19, %21, %cst_21 {dimension_numbers = #tpu.dot_dimension_numbers<[1], [0], [0], [1], [0, 0, 1, 1], [], []>} : vector<8x16xf32>, vector<16x32xf32>, vector<8x32xf32> -> vector<8x32xf32>
    %c0_22 = arith.constant 0 : index
    %c0_23 = arith.constant 0 : index
    %23 = vector.load %arg9[%c0_22, %c0_23] : memref<1x32xf32, #tpu.memory_space<vmem>>, vector<1x32xf32>
    %24 = vector.broadcast %23 : vector<1x32xf32> to vector<8x32xf32>
    %25 = arith.addf %22, %24 : vector<8x32xf32>
    %cst_24 = arith.constant 0.000000e+00 : f32
    %26 = vector.broadcast %cst_24 : f32 to vector<8x32xf32>
    %27 = arith.maximumf %25, %26 : vector<8x32xf32>
    %c0_25 = arith.constant 0 : index
    %c0_26 = arith.constant 0 : index
    %28 = vector.load %arg10[%c0_25, %c0_26] : memref<32x64xf32, #tpu.memory_space<vmem>>, vector<32x64xf32>
    %cst_27 = arith.constant dense<0.000000e+00> : vector<8x64xf32>
    %29 = tpu.matmul %27, %28, %cst_27 {dimension_numbers = #tpu.dot_dimension_numbers<[1], [0], [0], [1], [0, 0, 1, 1], [], []>} : vector<8x32xf32>, vector<32x64xf32>, vector<8x64xf32> -> vector<8x64xf32>
    %c0_28 = arith.constant 0 : index
    %c0_29 = arith.constant 0 : index
    %30 = vector.load %arg11[%c0_28, %c0_29] : memref<1x64xf32, #tpu.memory_space<vmem>>, vector<1x64xf32>
    %31 = vector.broadcast %30 : vector<1x64xf32> to vector<8x64xf32>
    %32 = arith.addf %29, %31 : vector<8x64xf32>
    %c0_30 = arith.constant 0 : index
    %c0_31 = arith.constant 0 : index
    %33 = vector.load %arg13[%c0_30, %c0_31] : memref<8x64xf32, #tpu.memory_space<vmem>>, vector<8x64xf32>
    tpu.vector_store %arg13[%c0_30, %c0_31], %32 {strides = array<i32>} : memref<8x64xf32, #tpu.memory_space<vmem>>, vector<8x64xf32>,
    return
  }
  func.func @transform_0(%arg0: i32) -> (i32, i32) {
    %c0_i32 = arith.constant 0 : i32
    %c0_i32_0 = arith.constant 0 : i32
    return %arg0, %c0_i32 : i32, i32
  }
  func.func @transform_1(%arg0: i32) -> (i32, i32) {
    %c0_i32 = arith.constant 0 : i32
    %c0_i32_0 = arith.constant 0 : i32
    %c0_i32_1 = arith.constant 0 : i32
    return %c0_i32, %c0_i32_0 : i32, i32
  }
  func.func @transform_2(%arg0: i32) -> (i32, i32) {
    %c0_i32 = arith.constant 0 : i32
    %c0_i32_0 = arith.constant 0 : i32
    %c0_i32_1 = arith.constant 0 : i32
    return %c0_i32, %c0_i32_0 : i32, i32
  }
  func.func @transform_3(%arg0: i32) -> (i32, i32) {
    %c0_i32 = arith.constant 0 : i32
    %c0_i32_0 = arith.constant 0 : i32
    %c0_i32_1 = arith.constant 0 : i32
    return %c0_i32, %c0_i32_0 : i32, i32
  }
  func.func @transform_4(%arg0: i32) -> (i32, i32) {
    %c0_i32 = arith.constant 0 : i32
    %c0_i32_0 = arith.constant 0 : i32
    %c0_i32_1 = arith.constant 0 : i32
    return %c0_i32, %c0_i32_0 : i32, i32
  }
  func.func @transform_5(%arg0: i32) -> (i32, i32) {
    %c0_i32 = arith.constant 0 : i32
    %c0_i32_0 = arith.constant 0 : i32
    %c0_i32_1 = arith.constant 0 : i32
    return %c0_i32, %c0_i32_0 : i32, i32
  }
  func.func @transform_6(%arg0: i32) -> (i32, i32) {
    %c0_i32 = arith.constant 0 : i32
    %c0_i32_0 = arith.constant 0 : i32
    %c0_i32_1 = arith.constant 0 : i32
    return %c0_i32, %c0_i32_0 : i32, i32
  }
  func.func @transform_7(%arg0: i32) -> (i32, i32) {
    %c0_i32 = arith.constant 0 : i32
    %c0_i32_0 = arith.constant 0 : i32
    %c0_i32_1 = arith.constant 0 : i32
    return %c0_i32, %c0_i32_0 : i32, i32
  }
  func.func @transform_8(%arg0: i32) -> (i32, i32) {
    %c0_i32 = arith.constant 0 : i32
    %c0_i32_0 = arith.constant 0 : i32
    %c0_i32_1 = arith.constant 0 : i32
    return %c0_i32, %c0_i32_0 : i32, i32
  }
  func.func @transform_9(%arg0: i32) -> (i32, i32) {
    %c0_i32 = arith.constant 0 : i32
    %c0_i32_0 = arith.constant 0 : i32
    %c0_i32_1 = arith.constant 0 : i32
    return %c0_i32, %c0_i32_0 : i32, i32
  }
  func.func @transform_10(%arg0: i32) -> (i32, i32) {
    %c0_i32 = arith.constant 0 : i32
    %c0_i32_0 = arith.constant 0 : i32
    %c0_i32_1 = arith.constant 0 : i32
    return %c0_i32, %c0_i32_0 : i32, i32
  }
  func.func @transform_11(%arg0: i32) -> (i32, i32) {
    %c0_i32 = arith.constant 0 : i32
    %c0_i32_0 = arith.constant 0 : i32
    return %arg0, %c0_i32 : i32, i32
  }
  func.func @transform_12(%arg0: i32) -> (i32, i32) {
    %c0_i32 = arith.constant 0 : i32
    %c0_i32_0 = arith.constant 0 : i32
    return %arg0, %c0_i32 : i32, i32
  }
}

</mosaic_0001>

<bundles_post_ra>
// kernel: model_autoencoder_forward.1
= control target key start
LH: loop header
LB: loop body
LE: loop exit
PB: predicated region body
PF: predicated region fallthrough
CT: control target
= control target key end

     0   :  { %18 = vsyncpa [#allocation3], 0  ;;  %v645_v1 = vmov 0.0   ;;  %vm646_vm0 = vmmov 0   ;;  %s841_s0 = inlined_call_operand.vmem [shape: f32[8,64], index: 0, kind: input, shape index: {}]   ;;  %s842_s1 = inlined_call_operand.vmem [shape: f32[64,32], index: 1, kind: input, shape index: {}]   ;;  %s843_s2 = inlined_call_operand.vmem [shape: f32[1,32], index: 2, kind: input, shape index: {}]   ;;  %s844_s3 = inlined_call_operand.vmem [shape: f32[32,32], index: 3, kind: input, shape index: {}]   ;;  %s845_s4 = inlined_call_operand.vmem [shape: f32[1,32], index: 4, kind: input, shape index: {}]   ;;  %s846_s5 = inlined_call_operand.vmem [shape: f32[32,16], index: 5, kind: input, shape index: {}]   ;;  %s847_s6 = inlined_call_operand.vmem [shape: f32[1,16], index: 6, kind: input, shape index: {}]   ;;  %s848_s7 = inlined_call_operand.vmem [shape: f32[16,32], index: 7, kind: input, shape index: {}]   ;;  %s849_s8 = inlined_call_operand.vmem [shape: f32[1,32], index: 8, kind: input, shape index: {}]   ;;  %s850_s9 = inlined_call_operand.vmem [shape: f32[32,64], index: 9, kind: input, shape index: {}]   ;;  %s851_s10 = inlined_call_operand.vmem [shape: f32[1,64], index: 10, kind: input, shape index: {}]   ;;  %s852_s11 = inlined_call_operand.hbm [shape: f32[8,16], index: 11, kind: output, shape index: {0}]   ;;  %s853_s12 = inlined_call_operand.hbm [shape: f32[8,64], index: 12, kind: output, shape index: {1}]  }
   0x1   :  { %v50_v0 = vld [vmem:[%s842_s1 + $0x38] sm:$0xff]  ;;  %538 = vmatprep.subr.mxu0 %v645_v1  ;;  %v49_v2 = vld [vmem:[%s842_s1 + $0x30] sm:$0xff]  ;;  %554 = vmatprep.mubr.msk.f32.mxu0 %vm646_vm0, %v645_v1  ;;  %v48_v3 = vld [vmem:[%s842_s1 + $0x28] sm:$0xff] }
   0x2   :  { %539 = vmatpush3.msra.mxu0 %v50_v0  ;;  %557 = vmatprep.subr.mxu1 %v645_v1  ;;  %v136_v4 = vld [vmem:[%s844_s3 + $0x18] sm:$0xff] }
   0x3   :  { %540 = vmatprep.subr.mxu0 %v645_v1  ;;  %565 = vmatprep.mubr.msk.f32.mxu1 %vm646_vm0, %v645_v1 }
   0x4   :  { %19 = vsyncpa [#allocation5], 0  ;;  %541 = vmatpush3.msra.mxu0 %v49_v2  ;;  %558 = vmatpush3.msra.mxu1 %v136_v4  ;;  %v47_v5 = vld [vmem:[%s842_s1 + $0x20] sm:$0xff]  ;;  %v46_v6 = vld [vmem:[%s842_s1 + $0x18] sm:$0xff]  ;;  %vm58_vm1 = vcmask 523264   ;;  %vm144_vm2 = vcmask 261120  }
   0x5   :  { %542 = vmatprep.subr.mxu0 %v645_v1  ;;  %559 = vmatprep.subr.mxu1 %v645_v1  ;;  %v45_v7 = vld [vmem:[%s842_s1 + $0x10] sm:$0xff]  ;;  %v44_v8 = vld [vmem:[%s842_s1 + $0x8] sm:$0xff]  ;;  %v43_v9 = vld [vmem:[%s842_s1] sm:$0xff]  ;;  %vm303_vm3 = vcmask 130048   ;;  %s647_s29 = smov [#allocation2]  }
   0x6   :  { %543 = vmatpush3.msra.mxu0 %v48_v3  ;;  %v42_v10 = vld [vmem:[%s841_s0] sm:$0xff]  ;;  %v135_v11 = vld [vmem:[%s844_s3 + $0x10] sm:$0xff]  ;;  %v134_v12 = vld [vmem:[%s844_s3 + $0x8] sm:$0xff]  ;;  %s479_s30 = sshll.u32 %s647_s29, 4  ;;  %s480_s30 = int_to_ptr.vmem [resolvable:$true] %s479_s30 }
   0x7   :  { %544 = vmatprep.subr.mxu0 %v645_v1  ;;  %560 = vmatpush3.msra.mxu1 %v135_v11  ;;  %v133_v13 = vld [vmem:[%s844_s3] sm:$0xff]  ;;  %v222_v19 = vld [vmem:[%s846_s5 + $0x18] sm:$0xff]  ;;  %v221_v20 = vld [vmem:[%s846_s5 + $0x10] sm:$0xff]  ;;  %s601_s3 = scalar_lea.vmem %s480_s30, 128  ;;  %p606_p1 = scmp.lt.s32.totalorder %s480_s30, %s480_s30 }
   0x8   :  { %545 = vmatpush3.msra.mxu0 %v47_v5  ;;  %561 = vmatprep.subr.mxu1 %v645_v1  ;;  %v501_v14 = vld [vmem:[%s843_s2] ss:$0 sm:$0xff]  ;;  %v220_v21 = vld [vmem:[%s846_s5 + $0x8] sm:$0xff]  ;;  %v391_v30 = vld [vmem:[%s850_s9 + $0x18] sm:$0xff]  ;;  %p602_p0 = scmp.ne.s32.totalorder %s480_s30, %s601_s3  ;;  %p607_p2 = scmp.lt.s32.totalorder %s601_s3, %s601_s3 }
   0x9   :  { %546 = vmatprep.subr.mxu0 %v645_v1  ;;  %562 = vmatpush3.msra.mxu1 %v134_v12  ;;  %v219_v22 = vld [vmem:[%s846_s5] sm:$0xff]  ;;  %v306_v23 = vld [vmem:[%s848_s7 + $0x8] sm:$0xff]  ;;  %v390_v35 = vld [vmem:[%s850_s9 + $0x10] sm:$0xff] }
   0xa   :  { %547 = vmatpush3.msra.mxu0 %v46_v6  ;;  %563 = vmatprep.subr.mxu1 %v645_v1  ;;  %v503_v24 = vld [vmem:[%s845_s4] ss:$0 sm:$0xff]  ;;  %v389_v36 = vld [vmem:[%s850_s9 + $0x8] sm:$0xff]  ;;  %p608_p3 = por %p607_p2, %p606_p1 }
   0xb   :  { %548 = vmatprep.subr.mxu0 %v645_v1  ;;  %564 = vmatpush3.msra.mxu1 %v133_v13  ;;  %v305_v29 = vld [vmem:[%s848_s7] sm:$0xff] }
   0xc   :  { %549 = vmatpush3.msra.mxu0 %v45_v7  ;;  %568 = vmatprep.subr.mxu1 %v645_v1  ;;  %v505_v31 = vld [vmem:[%s847_s6] ss:$0 sm:$0xff]  ;;  %p609_p4 = pnand %p608_p3, %p602_p0 }
   0xd   :  { %550 = vmatprep.subr.mxu0 %v645_v1  ;;  %v388_v37 = vld [vmem:[%s850_s9] sm:$0xff] }
   0xe   :  { %551 = vmatpush3.msra.mxu0 %v44_v8  ;;  %v507_v38 = vld [vmem:[%s849_s8] ss:$0 sm:$0xff] }
   0xf   :  { %552 = vmatprep.subr.mxu0 %v645_v1 }
  0x10   :  { %553 = vmatpush3.msra.mxu0 %v43_v9 }
  0x11   :  { %555 = vmatmul.mubr.msk.f32.vlgmr.msra.gmra.mxu0 %vm58_vm1, %v42_v10  ;;  %579 = vmatprep.subr.mxu0 %v645_v1 }
  0x12   :  { %583 = vmatprep.mubr.msk.f32.mxu0 %vm646_vm0, %v645_v1  ;;  %580 = vmatpush3.msra.mxu0 %v306_v23 }
  0x13   :  { %581 = vmatprep.subr.mxu0 %v645_v1 }
  0x14   :  { %582 = vmatpush3.msra.mxu0 %v305_v29 }
  0xd1   :  { %v128_v15 = vpop.f32.mrf.mxu0 }
  0xd2   :  { %v129_v16 = vadd.f32 %v501_v14, %v128_v15 }
  0xd3   :  { %v556_v17 = vpop.f32.mrf.mxu0 }
  0xd4   :  { %v132_v18 = vmax.f32 %v129_v16, 0.0 }
  0xd6   :  { %566 = vmatmul.mubr.msk.f32.vlgmr.msra.gmra.mxu1 %vm144_vm2, %v132_v18 }
  0xd7   :  { %569 = vmatpush3.msra.mxu1 %v222_v19  ;;  %576 = vmatprep.mubr.msk.f32.mxu1 %vm646_vm0, %v645_v1 }
  0xd8   :  { %570 = vmatprep.subr.mxu1 %v645_v1 }
  0xd9   :  { %571 = vmatpush3.msra.mxu1 %v221_v20 }
  0xda   :  { %572 = vmatprep.subr.mxu1 %v645_v1 }
  0xdb   :  { %573 = vmatpush3.msra.mxu1 %v220_v21 }
  0xdc   :  { %574 = vmatprep.subr.mxu1 %v645_v1 }
  0xdd   :  { %575 = vmatpush3.msra.mxu1 %v219_v22 }
  0xde   :  { %586 = vmatprep.subr.mxu1 %v645_v1 }
 0x196   :  { %v214_v25 = vpop.f32.mrf.mxu1 }
 0x197   :  { %v215_v26 = vadd.f32 %v503_v24, %v214_v25 }
 0x198   :  { %v567_v27 = vpop.f32.mrf.mxu1 }
 0x199   :  { %v218_v28 = vmax.f32 %v215_v26, 0.0 }
 0x19b   :  { %577 = vmatmul.mubr.msk.f32.vlgmr.msra.gmra.mxu1 %vm144_vm2, %v218_v28 }
 0x19c   :  { %594 = vmatprep.mubr.msk.f32.mxu1 %vm646_vm0, %v645_v1  ;;  %587 = vmatpush3.msra.mxu1 %v391_v30 }
 0x19d   :  { %588 = vmatprep.subr.mxu1 %v645_v1 }
 0x19e   :  { %589 = vmatpush3.msra.mxu1 %v390_v35 }
 0x19f   :  { %590 = vmatprep.subr.mxu1 %v645_v1 }
 0x1a0   :  { %591 = vmatpush3.msra.mxu1 %v389_v36 }
 0x1a1   :  { %592 = vmatprep.subr.mxu1 %v645_v1 }
 0x1a2   :  { %593 = vmatpush3.msra.mxu1 %v388_v37 }
 0x25b   :  { %v299_v32 = vpop.f32.mrf.mxu1 }
 0x25c   :  { %v300_v33 = vadd.f32 %v505_v31, %v299_v32 }
 0x25d   :  { %v578_v34 = vpop.f32.mrf.mxu1 }
 0x25e   :  { %584 = vmatmul.mubr.msk.f32.vlgmr.msra.gmra.mxu0 %vm303_vm3, %v300_v33  ;;  %304 = vst.msk [vmem:[#allocation2] sm:$0xff] %vm303_vm3, %v300_v33 }
 0x31e   :  { %v383_v39 = vpop.f32.mrf.mxu0 }
 0x31f   :  { %v384_v40 = vadd.f32 %v507_v38, %v383_v39 }
 0x320   :  { %v585_v41 = vpop.f32.mrf.mxu0 }
 0x321   :  { %v387_v42 = vmax.f32 %v384_v40, 0.0 }
 0x323   :  { %595 = vmatmul.mubr.msk.f32.vlgmr.msra.gmra.mxu1 %vm144_vm2, %v387_v42 }
 0x324   :  { %612 = shalt.err (!%p609_p4)
}
 0x325   :  { %482 = dma.vmem_to_hbm [thread:$0]  %s480_s30, 128, %s852_s11, [#allocation3]   ;;  %v509_v43 = vld [vmem:[%s851_s10] ss:$0 sm:$0xff] }
 0x326   :  { %s648_s14 = smov [#allocation4]  }
 0x327   :  { %s489_s15 = sshll.u32 %s648_s14, 4  ;;  %s490_s15 = int_to_ptr.vmem [resolvable:$true] %s489_s15 }
 0x328   :  { %s621_s16 = scalar_lea.vmem %s490_s15, 128  ;;  %p626_p6 = scmp.lt.s32.totalorder %s490_s15, %s490_s15 }
 0x329   :  { %p622_p5 = scmp.ne.s32.totalorder %s490_s15, %s621_s16  ;;  %p627_p7 = scmp.lt.s32.totalorder %s621_s16, %s621_s16 }
 0x32b   :  { %p628_p8 = por %p627_p7, %p626_p6 }
 0x32d   :  { %p629_p9 = pnand %p628_p8, %p622_p5 }
 0x3e3   :  { %v468_v44 = vpop.f32.mrf.mxu1 }
 0x3e4   :  { %v469_v45 = vadd.f32 %v509_v43, %v468_v44 }
 0x3e5   :  { %v596_v46 = vpop.f32.mrf.mxu1 }
 0x3e6   :  { %472 = vst.msk [vmem:[#allocation4] sm:$0xff] %vm58_vm1, %v469_v45 }
 0x3e7   :  { %632 = shalt.err (!%p629_p9)
}
 0x3e8   :  { %492 = dma.vmem_to_hbm [thread:$0]  %s490_s15, 128, %s853_s12, [#allocation5]  }
 0x3e9   :  { %641 = dma.done.wait [#allocation3], 128  }
 0x3ea   :  { %642 = vsyncadd [#allocation3], 4294967168 }
 0x3eb   :  { %643 = dma.done.wait [#allocation5], 128  }
 0x3ec   :  { %644 = vsyncadd [#allocation5], 4294967168 }
 0x3ed   :  { %499 = vsyncpa [#allocation3], 1 }
 0x3ee   :  { %500 = vsyncpa [#allocation5], 1 }

</bundles_post_ra>
